<compile_context>
chip_gen: v5e
topology: v5e:2x2
jax: 0.10.0
libtpu: 0.0.40
codegen_flags: <defaults>
</compile_context>

<pallas_src>
import jax
import jax.numpy as jnp
from jax import lax
from jax.experimental import pallas as pl
from jax.experimental.pallas import tpu as pltpu


def resunit_kernel(x_ref, t1_ref, b1_ref, t2_ref, b2_ref, wr_ref, br_ref,
                   o_ref, xpad_ref):
    """One grid step processes NB images stacked along rows (stride H+4).

    x_ref   : (NB, H, W*Ci)           bf16 unpadded lane-dense activations
    t1_ref  : (3, W*Ci, (W+2)*Co)     bf16 CBL1 Toeplitz (3x3 o 1x1 o BN-scale, col-pad folded)
    b1_ref  : (1, (W+2)*Co)           f32  CBL1 folded BN shift, tiled over x
    t2_ref  : (3, (W+2)*Co, W*Co)     bf16 CBL2 Toeplitz (col pad-ring rows zeroed)
    b2_ref  : (1, W*Co)               f32  CBL2 folded BN shift, tiled over x
    wr_ref  : (W*Ci, W*Co)            bf16 residual 1x1, block-diagonal over x
    br_ref  : (1, W*Co)               f32  residual bias, tiled over x
    o_ref   : (NB, H, W*Co)           f32  output block (W*Co == 128, full-lane stores)
    xpad_ref: (NB*(H+4), W*Ci)        bf16 VMEM scratch: row-padded stacked slab
    """
    NB, H, WCi = x_ref.shape
    Hp = H + 4
    M1 = NB * Hp            # stacked, row-padded activation rows
    M1c = M1 - 2            # CBL1 padded-grid rows computed
    M2c = M1 - 4            # CBL2 / residual / output rows computed

    # ---- build the row-padded stacked slab in VMEM (no padded HBM copy) ----
    xpad_ref[...] = jnp.zeros_like(xpad_ref)
    for n in range(NB):                                   # static unroll
        xpad_ref[n * Hp + 2:n * Hp + 2 + H, :] = x_ref[n]
    xp = xpad_ref[...]                                    # (M1, W*Ci) bf16

    # ---- CBL #1: 3 row-shifted Toeplitz matmuls, bf16 MXU / f32 accumulation ----
    c1 = jnp.dot(xp[0:M1c], t1_ref[0], preferred_element_type=jnp.float32)
    c1 = c1 + jnp.dot(xp[1:M1c + 1], t1_ref[1], preferred_element_type=jnp.float32)
    c1 = c1 + jnp.dot(xp[2:M1c + 2], t1_ref[2], preferred_element_type=jnp.float32)
    h1 = c1 + b1_ref[...]                                 # folded BN shift (f32)
    h1 = jnp.maximum(h1, 0.1 * h1)                        # LeakyReLU(0.1), 2 VALU ops

    # zero the 1-row pad ring of each image's padded CBL1 grid
    # (the column pad-ring is already folded into t2 as zeroed rows)
    rr = lax.broadcasted_iota(jnp.int32, (M1c, 1), 0)
    keep = rr < 0                                         # all-False
    for n in range(NB):                                   # static unroll
        lo = n * Hp + 1
        keep = keep | ((rr >= lo) & (rr <= lo + H - 1))
    h1 = jnp.where(keep, h1, 0.0).astype(jnp.bfloat16)    # -> bf16 for the MXU

    # ---- CBL #2: 3 row-shifted Toeplitz matmuls -> lane-dense (M2c, W*Co) ----
    c2 = jnp.dot(h1[0:M2c], t2_ref[0], preferred_element_type=jnp.float32)
    c2 = c2 + jnp.dot(h1[1:M2c + 1], t2_ref[1], preferred_element_type=jnp.float32)
    c2 = c2 + jnp.dot(h1[2:M2c + 2], t2_ref[2], preferred_element_type=jnp.float32)
    h2 = c2 + b2_ref[...]
    h2 = jnp.maximum(h2, 0.1 * h2)

    # ---- residual branch: block-diagonal 1x1 conv on the same stacked slab ----
    xr = jnp.dot(xp[2:M2c + 2], wr_ref[...],
                 preferred_element_type=jnp.float32) + br_ref[...]

    y = h2 + xr                                           # (M2c, W*Co) f32

    # ---- per-image extraction; unmasked full-lane (128-wide) stores ----
    for n in range(NB):                                   # static unroll
        o_ref[n] = y[n * Hp:n * Hp + H].astype(o_ref.dtype)


def prepare_resunit(p, H, W):
    """Hoisted weight preprocessing: run ONCE at init, not per forward call."""
    Ci, Co = p["wr"].shape
    f32, bf16 = jnp.float32, jnp.bfloat16

    # Fold each CBL's 1x1 conv + inference-BN scale into the 3x3 kernel (exact: all linear).
    w1f = jnp.einsum("yxab,bo->yxao", p["w1a"], p["w1b"]) * p["bn1_scale"]   # (3,3,Ci,Co)
    w2f = jnp.einsum("yxab,bo->yxao", p["w2a"], p["w2b"]) * p["bn2_scale"]   # (3,3,Co,Co)

    # CBL1 Toeplitz: unpadded columns (W*Ci) -> padded-grid columns ((W+2)*Co).
    # Column zero-padding is folded in via the rectangular eye offsets.
    t1 = []
    for dy in range(3):
        acc = jnp.zeros((W * Ci, (W + 2) * Co), f32)
        for dx in range(3):
            sel = jnp.eye(W, W + 2, k=2 - dx, dtype=f32)   # input col j -> output col j+2-dx
            acc = acc + jnp.kron(sel, w1f[dy, dx])
        t1.append(acc)
    t1 = jnp.stack(t1)                                     # (3, W*Ci, (W+2)*Co)

    # CBL2 Toeplitz: padded-grid columns -> W*Co; zero the rows belonging to the
    # column pad-ring (c in {0, W+1}) so h1's garbage pad columns are ignored.
    colmask = jnp.ones((W + 2,), f32).at[0].set(0.0).at[W + 1].set(0.0)
    t2 = []
    for dy in range(3):
        acc = jnp.zeros(((W + 2) * Co, W * Co), f32)
        for dx in range(3):
            sel = jnp.eye(W + 2, W, k=-dx, dtype=f32) * colmask[:, None]
            acc = acc + jnp.kron(sel, w2f[dy, dx])
        t2.append(acc)
    t2 = jnp.stack(t2)                                     # (3, (W+2)*Co, W*Co)

    wr_blk = jnp.kron(jnp.eye(W, dtype=f32), p["wr"])      # (W*Ci, W*Co) block-diag

    b1r = jnp.tile(p["bn1_shift"], W + 2).reshape(1, (W + 2) * Co).astype(f32)
    b2r = jnp.tile(p["bn2_shift"], W).reshape(1, W * Co).astype(f32)
    brr = jnp.tile(p["br"], W).reshape(1, W * Co).astype(f32)

    return {
        "t1": t1.astype(bf16), "t2": t2.astype(bf16), "wr_blk": wr_blk.astype(bf16),
        "b1r": b1r, "b2r": b2r, "brr": brr,
        "Ci": Ci, "Co": Co, "H": H, "W": W,
    }


def resunit_pallas(x_nchw, prep, batch_block=4):
    """Forward pass: NCHW in, NCHW out (matching the PyTorch module)."""
    H, W, Ci, Co = prep["H"], prep["W"], prep["Ci"], prep["Co"]
    N = x_nchw.shape[0]
    assert x_nchw.shape[1:] == (Ci, H, W)

    nb = min(N, batch_block)           # images per grid step (raises matmul M,
    while N % nb:                      # amortizes per-step overhead)
        nb -= 1
    Hp = H + 4

    # NCHW -> NHWC -> lane-dense (N, H, W*Ci) bf16 slab (no HBM pad copy).
    # TODO(synk): keeping the surrounding network NHWC end-to-end would remove this transpose.
    x = jnp.transpose(x_nchw, (0, 2, 3, 1)).reshape(N, H, W * Ci).astype(jnp.bfloat16)

    args = (x, prep["t1"], prep["b1r"], prep["t2"], prep["b2r"],
            prep["wr_blk"], prep["brr"])

    def const_spec(a):
        nd = a.ndim
        return pl.BlockSpec(a.shape, lambda b, _nd=nd: (0,) * _nd)

    in_specs = ([pl.BlockSpec((nb, H, W * Ci), lambda b: (b, 0, 0))]
                + [const_spec(a) for a in args[1:]])

    # NOTE: at real sizes add vmem_limit_bytes=... and pipeline_mode=pl.Buffered(1)
    #       on the constant weight specs (sized per generation: v5e/v6e/v7x).
    out = pl.pallas_call(
        resunit_kernel,
        out_shape=jax.ShapeDtypeStruct((N, H, W * Co), jnp.float32),
        grid=(N // nb,),
        in_specs=in_specs,
        out_specs=pl.BlockSpec((nb, H, W * Co), lambda b: (b, 0, 0)),
        scratch_shapes=[pltpu.VMEM((nb * Hp, W * Ci), jnp.bfloat16)],
        compiler_params=pltpu.CompilerParams(dimension_semantics=("parallel",)),
    )(*args)

    # (N, H, W*Co) -> (N, H, W, Co) -> NCHW  (contiguous reshape, free)
    return jnp.transpose(out.reshape(N, H, W, Co), (0, 3, 1, 2))


def ref_resunit(x_nchw, p):
    """Pure-JAX f32 reference (same inference-mode BN semantics)."""
    x = jnp.transpose(x_nchw, (0, 2, 3, 1)).astype(jnp.float32)

    def conv(v, w, pad):
        return lax.conv_general_dilated(
            v, w, (1, 1), pad, dimension_numbers=("NHWC", "HWIO", "NHWC"))

    xr = conv(x, p["wr"][None, None], [(0, 0), (0, 0)]) + p["br"]

    h = conv(x, p["w1a"], [(1, 1), (1, 1)])
    h = conv(h, p["w1b"][None, None], [(0, 0), (0, 0)])
    h = h * p["bn1_scale"] + p["bn1_shift"]
    h = jnp.where(h > 0, h, 0.1 * h)

    h = conv(h, p["w2a"], [(1, 1), (1, 1)])
    h = conv(h, p["w2b"][None, None], [(0, 0), (0, 0)])
    h = h * p["bn2_scale"] + p["bn2_shift"]
    h = jnp.where(h > 0, h, 0.1 * h)

    return jnp.transpose(h + xr, (0, 3, 1, 2))


def init_params(key, in_channels=16, out_channels=32, factor=0.25):
    Ci = round(in_channels * factor)     # 4
    Co = round(out_channels * factor)    # 8
    ks = jax.random.split(key, 6)

    def kaiming(k, shape, fan_in):
        return (jax.random.normal(k, shape, jnp.float32)
                * jnp.sqrt(2.0 / fan_in)).astype(jnp.float32)

    eps = 1e-5
    gamma = jnp.ones((Co,), jnp.float32)          # weight_init: BN weight = 1
    beta = jnp.zeros((Co,), jnp.float32)          # weight_init: BN bias = 0
    running_mean = jnp.zeros((Co,), jnp.float32)
    running_var = jnp.ones((Co,), jnp.float32)
    bn_scale = gamma / jnp.sqrt(running_var + eps)
    bn_shift = beta - running_mean * bn_scale

    return {
        "w1a": kaiming(ks[0], (3, 3, Ci, Ci), 9 * Ci),   # CBL1 3x3 (HWIO)
        "w1b": kaiming(ks[1], (Ci, Co), Ci),             # CBL1 1x1
        "bn1_scale": bn_scale, "bn1_shift": bn_shift,
        "w2a": kaiming(ks[2], (3, 3, Co, Co), 9 * Co),   # CBL2 3x3 (HWIO)
        "w2b": kaiming(ks[3], (Co, Co), Co),             # CBL2 1x1
        "bn2_scale": bn_scale, "bn2_shift": bn_shift,
        "wr": kaiming(ks[4], (Ci, Co), Ci),              # residual 1x1
        "br": (jax.random.normal(ks[5], (Co,), jnp.float32) * 0.1),
    }, Ci, Co


if __name__ == "__main__":
    key = jax.random.PRNGKey(0)
    k_param, k_x = jax.random.split(key)

    # ResUnit(in_channels=16, out_channels=32, factor=0.25) -> Ci=4, Co=8
    params, Ci, Co = init_params(k_param, in_channels=16, out_channels=32, factor=0.25)

    N, H, W = 2, 16, 16
    x = jax.random.normal(k_x, (N, Ci, H, W), jnp.float32)   # NCHW, like PyTorch

    prep = prepare_resunit(params, H, W)                     # hoisted: once at init
    prep = jax.tree_util.tree_map(
        lambda a: jax.block_until_ready(a) if isinstance(a, jax.Array) else a, prep)

    out = jax.block_until_ready(resunit_pallas(x, prep))
    ref = jax.block_until_ready(ref_resunit(x, params))

    assert out.shape == (N, Co, H, W), out.shape
    err = float(jnp.max(jnp.abs(out - ref)))
    scale = float(jnp.max(jnp.abs(ref)))
    # bf16 MXU inputs with f32 accumulation: allow ~3% of the output scale.
    assert err <= 3e-2 * scale + 1e-2, (err, scale)

    print("KERNEL_OK")
</pallas_src>

<mosaic_0001>
module attributes {stable_mosaic.version = 11 : i64} {
  func.func @resunit_kernel(%arg0: i32, %arg1: memref<2x16x64xbf16, #tpu.memory_space<vmem>>, %arg2: memref<3x64x144xbf16, #tpu.memory_space<vmem>>, %arg3: memref<1x144xf32, #tpu.memory_space<vmem>>, %arg4: memref<3x144x128xbf16, #tpu.memory_space<vmem>>, %arg5: memref<1x128xf32, #tpu.memory_space<vmem>>, %arg6: memref<64x128xbf16, #tpu.memory_space<vmem>>, %arg7: memref<1x128xf32, #tpu.memory_space<vmem>>, %arg8: memref<2x16x128xf32, #tpu.memory_space<vmem>>, %arg9: memref<40x64xbf16, #tpu.memory_space<vmem>>) attributes {dimension_semantics = [#tpu.dimension_semantics<parallel>], iteration_bounds = array<i64: 1>, scalar_prefetch = 0 : i64, scratch_operands = 1 : i64, tpu.core_type = #tpu.core_type<tc>, window_params = [{transform_indices = @transform_0, window_bounds = array<i64: 2, 16, 64>}, {pipeline_mode = #tpu.pipeline_mode<synchronous>, transform_indices = @transform_1, window_bounds = array<i64: 3, 64, 144>}, {pipeline_mode = #tpu.pipeline_mode<synchronous>, transform_indices = @transform_2, window_bounds = array<i64: 1, 144>}, {pipeline_mode = #tpu.pipeline_mode<synchronous>, transform_indices = @transform_3, window_bounds = array<i64: 3, 144, 128>}, {pipeline_mode = #tpu.pipeline_mode<synchronous>, transform_indices = @transform_4, window_bounds = array<i64: 1, 128>}, {pipeline_mode = #tpu.pipeline_mode<synchronous>, transform_indices = @transform_5, window_bounds = array<i64: 64, 128>}, {pipeline_mode = #tpu.pipeline_mode<synchronous>, transform_indices = @transform_6, window_bounds = array<i64: 1, 128>}, {transform_indices = @transform_7, window_bounds = array<i64: 2, 16, 128>}]} {
    %cst = arith.constant 0.000000e+00 : bf16
    %0 = vector.broadcast %cst : bf16 to vector<40x64xbf16>
    %c0 = arith.constant 0 : index
    %c0_0 = arith.constant 0 : index
    %1 = vector.load %arg9[%c0, %c0_0] : memref<40x64xbf16, #tpu.memory_space<vmem>>, vector<40x64xbf16>
    tpu.vector_store %arg9[%c0, %c0_0], %0 {strides = array<i32>} : memref<40x64xbf16, #tpu.memory_space<vmem>>, vector<40x64xbf16>,
    %c0_1 = arith.constant 0 : index
    %c0_2 = arith.constant 0 : index
    %c0_3 = arith.constant 0 : index
    %2 = vector.load %arg1[%c0_1, %c0_2, %c0_3] : memref<2x16x64xbf16, #tpu.memory_space<vmem>>, vector<1x16x64xbf16>
    %3 = vector.shape_cast %2 : vector<1x16x64xbf16> to vector<16x64xbf16>
    %c2 = arith.constant 2 : index
    %c0_4 = arith.constant 0 : index
    %4 = vector.load %arg9[%c2, %c0_4] : memref<40x64xbf16, #tpu.memory_space<vmem>>, vector<16x64xbf16>
    tpu.vector_store %arg9[%c2, %c0_4], %3 {strides = array<i32>} : memref<40x64xbf16, #tpu.memory_space<vmem>>, vector<16x64xbf16>,
    %c1 = arith.constant 1 : index
    %c0_5 = arith.constant 0 : index
    %c0_6 = arith.constant 0 : index
    %5 = vector.load %arg1[%c1, %c0_5, %c0_6] : memref<2x16x64xbf16, #tpu.memory_space<vmem>>, vector<1x16x64xbf16>
    %6 = vector.shape_cast %5 : vector<1x16x64xbf16> to vector<16x64xbf16>
    %c22 = arith.constant 22 : index
    %c0_7 = arith.constant 0 : index
    %7 = vector.load %arg9[%c22, %c0_7] : memref<40x64xbf16, #tpu.memory_space<vmem>>, vector<16x64xbf16>
    tpu.vector_store %arg9[%c22, %c0_7], %6 {strides = array<i32>} : memref<40x64xbf16, #tpu.memory_space<vmem>>, vector<16x64xbf16>,
    %c0_8 = arith.constant 0 : index
    %c0_9 = arith.constant 0 : index
    %8 = vector.load %arg9[%c0_8, %c0_9] : memref<40x64xbf16, #tpu.memory_space<vmem>>, vector<40x64xbf16>
    %9 = vector.extract_strided_slice %8 {offsets = [0, 0], sizes = [38, 64], strides = [1, 1]} : vector<40x64xbf16> to vector<38x64xbf16>
    %c0_10 = arith.constant 0 : index
    %c0_11 = arith.constant 0 : index
    %c0_12 = arith.constant 0 : index
    %10 = vector.load %arg2[%c0_10, %c0_11, %c0_12] : memref<3x64x144xbf16, #tpu.memory_space<vmem>>, vector<1x64x144xbf16>
    %11 = vector.shape_cast %10 : vector<1x64x144xbf16> to vector<64x144xbf16>
    %cst_13 = arith.constant dense<0.000000e+00> : vector<38x144xf32>
    %12 = tpu.matmul %9, %11, %cst_13 {dimension_numbers = #tpu.dot_dimension_numbers<[1], [0], [0], [1], [0, 0, 1, 1], [], []>} : vector<38x64xbf16>, vector<64x144xbf16>, vector<38x144xf32> -> vector<38x144xf32>
    %13 = vector.extract_strided_slice %8 {offsets = [1, 0], sizes = [38, 64], strides = [1, 1]} : vector<40x64xbf16> to vector<38x64xbf16>
    %c1_14 = arith.constant 1 : index
    %c0_15 = arith.constant 0 : index
    %c0_16 = arith.constant 0 : index
    %14 = vector.load %arg2[%c1_14, %c0_15, %c0_16] : memref<3x64x144xbf16, #tpu.memory_space<vmem>>, vector<1x64x144xbf16>
    %15 = vector.shape_cast %14 : vector<1x64x144xbf16> to vector<64x144xbf16>
    %cst_17 = arith.constant dense<0.000000e+00> : vector<38x144xf32>
    %16 = tpu.matmul %13, %15, %cst_17 {dimension_numbers = #tpu.dot_dimension_numbers<[1], [0], [0], [1], [0, 0, 1, 1], [], []>} : vector<38x64xbf16>, vector<64x144xbf16>, vector<38x144xf32> -> vector<38x144xf32>
    %17 = arith.addf %12, %16 : vector<38x144xf32>
    %18 = vector.extract_strided_slice %8 {offsets = [2, 0], sizes = [38, 64], strides = [1, 1]} : vector<40x64xbf16> to vector<38x64xbf16>
    %c2_18 = arith.constant 2 : index
    %c0_19 = arith.constant 0 : index
    %c0_20 = arith.constant 0 : index
    %19 = vector.load %arg2[%c2_18, %c0_19, %c0_20] : memref<3x64x144xbf16, #tpu.memory_space<vmem>>, vector<1x64x144xbf16>
    %20 = vector.shape_cast %19 : vector<1x64x144xbf16> to vector<64x144xbf16>
    %cst_21 = arith.constant dense<0.000000e+00> : vector<38x144xf32>
    %21 = tpu.matmul %18, %20, %cst_21 {dimension_numbers = #tpu.dot_dimension_numbers<[1], [0], [0], [1], [0, 0, 1, 1], [], []>} : vector<38x64xbf16>, vector<64x144xbf16>, vector<38x144xf32> -> vector<38x144xf32>
    %22 = arith.addf %17, %21 : vector<38x144xf32>
    %c0_22 = arith.constant 0 : index
    %c0_23 = arith.constant 0 : index
    %23 = vector.load %arg3[%c0_22, %c0_23] : memref<1x144xf32, #tpu.memory_space<vmem>>, vector<1x144xf32>
    %24 = vector.broadcast %23 : vector<1x144xf32> to vector<38x144xf32>
    %25 = arith.addf %22, %24 : vector<38x144xf32>
    %cst_24 = arith.constant 1.000000e-01 : f32
    %26 = vector.broadcast %cst_24 : f32 to vector<38x144xf32>
    %27 = arith.mulf %26, %25 : vector<38x144xf32>
    %28 = arith.maximumf %25, %27 : vector<38x144xf32>
    %29 = tpu.iota {dimensions = array<i32: 0>} : vector<38x1xi32>
    %c0_i32 = arith.constant 0 : i32
    %30 = vector.broadcast %c0_i32 : i32 to vector<38x1xi32>
    %31 = arith.cmpi slt, %29, %30 : vector<38x1xi32>
    %c1_i32 = arith.constant 1 : i32
    %32 = vector.broadcast %c1_i32 : i32 to vector<38x1xi32>
    %33 = arith.cmpi sge, %29, %32 : vector<38x1xi32>
    %c16_i32 = arith.constant 16 : i32
    %34 = vector.broadcast %c16_i32 : i32 to vector<38x1xi32>
    %35 = arith.cmpi sle, %29, %34 : vector<38x1xi32>
    %36 = arith.andi %33, %35 : vector<38x1xi1>
    %37 = arith.ori %31, %36 : vector<38x1xi1>
    %c21_i32 = arith.constant 21 : i32
    %38 = vector.broadcast %c21_i32 : i32 to vector<38x1xi32>
    %39 = arith.cmpi sge, %29, %38 : vector<38x1xi32>
    %c36_i32 = arith.constant 36 : i32
    %40 = vector.broadcast %c36_i32 : i32 to vector<38x1xi32>
    %41 = arith.cmpi sle, %29, %40 : vector<38x1xi32>
    %42 = arith.andi %39, %41 : vector<38x1xi1>
    %43 = arith.ori %37, %42 : vector<38x1xi1>
    %cst_25 = arith.constant 0.000000e+00 : f32
    %44 = vector.shape_cast %43 : vector<38x1xi1> to vector<38x1xi1>
    %45 = vector.broadcast %44 : vector<38x1xi1> to vector<38x144xi1>
    %46 = vector.broadcast %cst_25 : f32 to vector<38x144xf32>
    %47 = arith.select %45, %28, %46 : vector<38x144xi1>, vector<38x144xf32>
    %48 = arith.truncf %47 : vector<38x144xf32> to vector<38x144xbf16>
    %49 = vector.extract_strided_slice %48 {offsets = [0, 0], sizes = [36, 144], strides = [1, 1]} : vector<38x144xbf16> to vector<36x144xbf16>
    %c0_26 = arith.constant 0 : index
    %c0_27 = arith.constant 0 : index
    %c0_28 = arith.constant 0 : index
    %50 = vector.load %arg4[%c0_26, %c0_27, %c0_28] : memref<3x144x128xbf16, #tpu.memory_space<vmem>>, vector<1x144x128xbf16>
    %51 = vector.shape_cast %50 : vector<1x144x128xbf16> to vector<144x128xbf16>
    %cst_29 = arith.constant dense<0.000000e+00> : vector<36x128xf32>
    %52 = tpu.matmul %49, %51, %cst_29 {dimension_numbers = #tpu.dot_dimension_numbers<[1], [0], [0], [1], [0, 0, 1, 1], [], []>} : vector<36x144xbf16>, vector<144x128xbf16>, vector<36x128xf32> -> vector<36x128xf32>
    %53 = vector.extract_strided_slice %48 {offsets = [1, 0], sizes = [36, 144], strides = [1, 1]} : vector<38x144xbf16> to vector<36x144xbf16>
    %c1_30 = arith.constant 1 : index
    %c0_31 = arith.constant 0 : index
    %c0_32 = arith.constant 0 : index
    %54 = vector.load %arg4[%c1_30, %c0_31, %c0_32] : memref<3x144x128xbf16, #tpu.memory_space<vmem>>, vector<1x144x128xbf16>
    %55 = vector.shape_cast %54 : vector<1x144x128xbf16> to vector<144x128xbf16>
    %cst_33 = arith.constant dense<0.000000e+00> : vector<36x128xf32>
    %56 = tpu.matmul %53, %55, %cst_33 {dimension_numbers = #tpu.dot_dimension_numbers<[1], [0], [0], [1], [0, 0, 1, 1], [], []>} : vector<36x144xbf16>, vector<144x128xbf16>, vector<36x128xf32> -> vector<36x128xf32>
    %57 = arith.addf %52, %56 : vector<36x128xf32>
    %58 = vector.extract_strided_slice %48 {offsets = [2, 0], sizes = [36, 144], strides = [1, 1]} : vector<38x144xbf16> to vector<36x144xbf16>
    %c2_34 = arith.constant 2 : index
    %c0_35 = arith.constant 0 : index
    %c0_36 = arith.constant 0 : index
    %59 = vector.load %arg4[%c2_34, %c0_35, %c0_36] : memref<3x144x128xbf16, #tpu.memory_space<vmem>>, vector<1x144x128xbf16>
    %60 = vector.shape_cast %59 : vector<1x144x128xbf16> to vector<144x128xbf16>
    %cst_37 = arith.constant dense<0.000000e+00> : vector<36x128xf32>
    %61 = tpu.matmul %58, %60, %cst_37 {dimension_numbers = #tpu.dot_dimension_numbers<[1], [0], [0], [1], [0, 0, 1, 1], [], []>} : vector<36x144xbf16>, vector<144x128xbf16>, vector<36x128xf32> -> vector<36x128xf32>
    %62 = arith.addf %57, %61 : vector<36x128xf32>
    %c0_38 = arith.constant 0 : index
    %c0_39 = arith.constant 0 : index
    %63 = vector.load %arg5[%c0_38, %c0_39] : memref<1x128xf32, #tpu.memory_space<vmem>>, vector<1x128xf32>
    %64 = vector.broadcast %63 : vector<1x128xf32> to vector<36x128xf32>
    %65 = arith.addf %62, %64 : vector<36x128xf32>
    %cst_40 = arith.constant 1.000000e-01 : f32
    %66 = vector.broadcast %cst_40 : f32 to vector<36x128xf32>
    %67 = arith.mulf %66, %65 : vector<36x128xf32>
    %68 = arith.maximumf %65, %67 : vector<36x128xf32>
    %69 = vector.extract_strided_slice %8 {offsets = [2, 0], sizes = [36, 64], strides = [1, 1]} : vector<40x64xbf16> to vector<36x64xbf16>
    %c0_41 = arith.constant 0 : index
    %c0_42 = arith.constant 0 : index
    %70 = vector.load %arg6[%c0_41, %c0_42] : memref<64x128xbf16, #tpu.memory_space<vmem>>, vector<64x128xbf16>
    %cst_43 = arith.constant dense<0.000000e+00> : vector<36x128xf32>
    %71 = tpu.matmul %69, %70, %cst_43 {dimension_numbers = #tpu.dot_dimension_numbers<[1], [0], [0], [1], [0, 0, 1, 1], [], []>} : vector<36x64xbf16>, vector<64x128xbf16>, vector<36x128xf32> -> vector<36x128xf32>
    %c0_44 = arith.constant 0 : index
    %c0_45 = arith.constant 0 : index
    %72 = vector.load %arg7[%c0_44, %c0_45] : memref<1x128xf32, #tpu.memory_space<vmem>>, vector<1x128xf32>
    %73 = vector.broadcast %72 : vector<1x128xf32> to vector<36x128xf32>
    %74 = arith.addf %71, %73 : vector<36x128xf32>
    %75 = arith.addf %68, %74 : vector<36x128xf32>
    %76 = vector.extract_strided_slice %75 {offsets = [0, 0], sizes = [16, 128], strides = [1, 1]} : vector<36x128xf32> to vector<16x128xf32>
    %c0_46 = arith.constant 0 : index
    %c0_47 = arith.constant 0 : index
    %c0_48 = arith.constant 0 : index
    %77 = vector.load %arg8[%c0_46, %c0_47, %c0_48] : memref<2x16x128xf32, #tpu.memory_space<vmem>>, vector<1x16x128xf32>
    %78 = vector.shape_cast %77 : vector<1x16x128xf32> to vector<16x128xf32>
    %79 = vector.shape_cast %76 : vector<16x128xf32> to vector<1x16x128xf32>
    tpu.vector_store %arg8[%c0_46, %c0_47, %c0_48], %79 {strides = array<i32>} : memref<2x16x128xf32, #tpu.memory_space<vmem>>, vector<1x16x128xf32>,
    %80 = vector.extract_strided_slice %75 {offsets = [20, 0], sizes = [16, 128], strides = [1, 1]} : vector<36x128xf32> to vector<16x128xf32>
    %c1_49 = arith.constant 1 : index
    %c0_50 = arith.constant 0 : index
    %c0_51 = arith.constant 0 : index
    %81 = vector.load %arg8[%c1_49, %c0_50, %c0_51] : memref<2x16x128xf32, #tpu.memory_space<vmem>>, vector<1x16x128xf32>
    %82 = vector.shape_cast %81 : vector<1x16x128xf32> to vector<16x128xf32>
    %83 = vector.shape_cast %80 : vector<16x128xf32> to vector<1x16x128xf32>
    tpu.vector_store %arg8[%c1_49, %c0_50, %c0_51], %83 {strides = array<i32>} : memref<2x16x128xf32, #tpu.memory_space<vmem>>, vector<1x16x128xf32>,
    return
  }
  func.func @transform_0(%arg0: i32) -> (i32, i32, i32) {
    %c0_i32 = arith.constant 0 : i32
    %c0_i32_0 = arith.constant 0 : i32
    %c0_i32_1 = arith.constant 0 : i32
    return %arg0, %c0_i32, %c0_i32_0 : i32, i32, i32
  }
  func.func @transform_1(%arg0: i32) -> (i32, i32, i32) {
    %c0_i32 = arith.constant 0 : i32
    %c0_i32_0 = arith.constant 0 : i32
    %c0_i32_1 = arith.constant 0 : i32
    %c0_i32_2 = arith.constant 0 : i32
    return %c0_i32, %c0_i32_0, %c0_i32_1 : i32, i32, i32
  }
  func.func @transform_2(%arg0: i32) -> (i32, i32) {
    %c0_i32 = arith.constant 0 : i32
    %c0_i32_0 = arith.constant 0 : i32
    %c0_i32_1 = arith.constant 0 : i32
    return %c0_i32, %c0_i32_0 : i32, i32
  }
  func.func @transform_3(%arg0: i32) -> (i32, i32, i32) {
    %c0_i32 = arith.constant 0 : i32
    %c0_i32_0 = arith.constant 0 : i32
    %c0_i32_1 = arith.constant 0 : i32
    %c0_i32_2 = arith.constant 0 : i32
    return %c0_i32, %c0_i32_0, %c0_i32_1 : i32, i32, i32
  }
  func.func @transform_4(%arg0: i32) -> (i32, i32) {
    %c0_i32 = arith.constant 0 : i32
    %c0_i32_0 = arith.constant 0 : i32
    %c0_i32_1 = arith.constant 0 : i32
    return %c0_i32, %c0_i32_0 : i32, i32
  }
  func.func @transform_5(%arg0: i32) -> (i32, i32) {
    %c0_i32 = arith.constant 0 : i32
    %c0_i32_0 = arith.constant 0 : i32
    %c0_i32_1 = arith.constant 0 : i32
    return %c0_i32, %c0_i32_0 : i32, i32
  }
  func.func @transform_6(%arg0: i32) -> (i32, i32) {
    %c0_i32 = arith.constant 0 : i32
    %c0_i32_0 = arith.constant 0 : i32
    %c0_i32_1 = arith.constant 0 : i32
    return %c0_i32, %c0_i32_0 : i32, i32
  }
  func.func @transform_7(%arg0: i32) -> (i32, i32, i32) {
    %c0_i32 = arith.constant 0 : i32
    %c0_i32_0 = arith.constant 0 : i32
    %c0_i32_1 = arith.constant 0 : i32
    return %arg0, %c0_i32, %c0_i32_0 : i32, i32, i32
  }
}

</mosaic_0001>

<bundles_post_ra>
// kernel: tpu_custom_call.1
= control target key start
LH: loop header
LB: loop body
LE: loop exit
PB: predicated region body
PF: predicated region fallthrough
CT: control target
= control target key end

     0   :  { %12 = vsyncpa [#allocation4], 0  ;;  %s1959_s0 = inlined_call_operand.hbm [shape: bf16[2,16,64], index: 0, kind: input, shape index: {}]   ;;  %s1960_s1 = inlined_call_operand.hbm [shape: bf16[3,64,144], index: 1, kind: input, shape index: {}]   ;;  %s1961_s2 = inlined_call_operand.hbm [shape: f32[1,144], index: 2, kind: input, shape index: {}]   ;;  %s1962_s3 = inlined_call_operand.hbm [shape: bf16[3,144,128], index: 3, kind: input, shape index: {}]   ;;  %s1963_s4 = inlined_call_operand.vmem [shape: f32[1,128], index: 4, kind: input, shape index: {}]   ;;  %s1964_s5 = inlined_call_operand.hbm [shape: bf16[64,128], index: 5, kind: input, shape index: {}]   ;;  %s1965_s6 = inlined_call_operand.vmem [shape: f32[1,128], index: 6, kind: input, shape index: {}]   ;;  %s1966_s7 = inlined_call_operand.hbm [shape: f32[2,16,128], index: 7, kind: output, shape index: {}]  }
   0x1   :  { %13 = vsyncpa [#allocation7], 0 }
   0x2   :  { %14 = vsyncpa [#allocation10], 0  ;;  %s33_s26 = sshll.u32 %s1960_s1, 4  ;;  %s34_s26 = int_to_ptr.hbm [resolvable:$true] %s33_s26 }
   0x3   :  { %15 = vsyncpa [#allocation5], 0  ;;  %s1700_s27 = smov [#allocation6]   ;;  %s1701_s29 = smov 128  }
   0x4   :  { %s35_s28 = sshll.u32 %s1700_s27, 4  ;;  %s1702_s30 = smov 8   ;;  %s36_s28 = int_to_ptr.vmem [resolvable:$true] %s35_s28 }
   0x5   :  { %41 = dma.hbm_to_vmem [thread:$0]  %s34_s26, 3072, %s36_s28, [#allocation7], %s1701_s29, %s1701_s29, %s1702_s30  }
   0x6   :  { %s57_s10 = sshll.u32 %s1962_s3, 4  ;;  %s1703_s11 = smov [#allocation9]   ;;  %s58_s10 = int_to_ptr.hbm [resolvable:$true] %s57_s10 }
   0x7   :  { %s59_s12 = sshll.u32 %s1703_s11, 4  ;;  %s20_s14 = sshll.u32 %s1959_s0, 4  ;;  %s60_s12 = int_to_ptr.vmem [resolvable:$true] %s59_s12  ;;  %s21_s14 = int_to_ptr.hbm [resolvable:$true] %s20_s14 }
   0x8   :  { %s1704_s15 = smov 64   ;;  %s1705_s16 = smov 4  }
   0x9   :  { %65 = dma.hbm_to_vmem [thread:$0]  %s58_s10, 3456, %s60_s12, [#allocation10], %s1704_s15, %s1704_s15, %s1705_s16  }
   0xa   :  { %s47_s19 = sshll.u32 %s1961_s2, 4  ;;  %s1706_s20 = smov [#allocation3]   ;;  %s48_s19 = int_to_ptr.hbm [resolvable:$true] %s47_s19 }
   0xb   :  { %s22_s21 = sshll.u32 %s1706_s20, 4  ;;  %s1707_s3 = smov [#allocation8]   ;;  %s23_s21 = int_to_ptr.vmem [resolvable:$true] %s22_s21 }
   0xc   :  { %28 = dma.hbm_to_vmem [thread:$0]  %s21_s14, 256, %s23_s21, [#allocation4], %s1704_s15, %s1704_s15, %s1705_s16  }
   0xd   :  { %s49_s22 = sshll.u32 %s1707_s3, 4  ;;  %s72_s0 = sshll.u32 %s1964_s5, 4  ;;  %s50_s22 = int_to_ptr.vmem [resolvable:$true] %s49_s22  ;;  %s73_s0 = int_to_ptr.hbm [resolvable:$true] %s72_s0 }
   0xe   :  { %52 = dma.hbm_to_vmem [thread:$0]  %s48_s19, 32, %s50_s22, [#allocation7]  }
   0xf   :  { %s1708_s25 = smov [#allocation11]  }
  0x10   :  { %s74_s26 = sshll.u32 %s1708_s25, 4  ;;  %s75_s26 = int_to_ptr.vmem [resolvable:$true] %s74_s26 }
  0x11   :  { %80 = dma.hbm_to_vmem [thread:$0]  %s73_s0, 512, %s75_s26, [#allocation10], %s1704_s15, %s1704_s15, %s1705_s16  }
  0x12   :  { %1692 = dma.done.wait [#allocation4], 256  }
  0x13   :  { %1693 = vsyncadd [#allocation4], 4294967040 }
  0x14   :  { %1694 = dma.done.wait [#allocation7], 3104  }
  0x15   :  { %1695 = vsyncadd [#allocation7], 4294964192 }
  0x16   :  { %1696 = dma.done.wait [#allocation10], 3968  }
  0x17   :  { %1697 = vsyncadd [#allocation10], 4294963328  ;;  %vm104_vm0 = vcmask 519168   ;;  %v1709_v0 = vmov 0   ;;  %vm128_vm1 = vcmask 516096   ;;  %vm135_vm2 = vcmask 1042432  }
  0x18   :  { %107 = vst.msk [vmem:[#allocation2 + $0x8] sm:$0xf] %vm104_vm0, %v1709_v0  ;;  %v1246_v1 = vld [vmem:[#allocation6 + $0x70] sm:$0xf]  ;;  %v1487_v2 = vld [vmem:[#allocation6 + $0x74] sm:$0xf0] }
  0x19   :  { %108 = vst.msk [vmem:[#allocation2 + $0xc] sm:$0xf] %vm104_vm0, %v1709_v0  ;;  %v1238_v3 = vld [vmem:[#allocation6 + $0x60] sm:$0xf]  ;;  %v1247_v4 = vor.u32 %v1487_v2, %v1246_v1  ;;  %v1485_v5 = vld [vmem:[#allocation6 + $0x64] sm:$0xf0] }
  0x1a   :  { %109 = vst.msk [vmem:[#allocation2 + $0x10] sm:$0xf] %vm104_vm0, %v1709_v0  ;;  %vm136_vm3 = vcmask 1046532   ;;  %vm146_vm4 = vcmask 519171   ;;  %vm149_vm5 = vcmask 518144   ;;  %v1239_v9 = vor.u32 %v1485_v5, %v1238_v3  ;;  %s1197_s10 = sshll.u32 %s1966_s7, 4  ;;  %s1198_s10 = int_to_ptr.hbm [resolvable:$true] %s1197_s10 }
  0x1b   :  { %105 = vst.msk [vmem:[#allocation2] sm:$0xf] %vm104_vm0, %v1709_v0  ;;  %v1230_v6 = vld [vmem:[#allocation6 + $0x50] sm:$0xf]  ;;  %v1478_v7 = vld [vmem:[#allocation6 + $0x34] sm:$0xf]  ;;  %1527 = vmatpush.bf16.msra.mxu1 %v1247_v4  ;;  %1528 = vmatpush.bf16.msra.mxu2 %v1247_v4  ;;  %vm1779_vm6 = vmor %vm135_vm2, %vm136_vm3 }
  0x1c   :  { %106 = vst.msk [vmem:[#allocation2 + $0x4] sm:$0xf] %vm104_vm0, %v1709_v0  ;;  %v1286_v8 = vld [vmem:[#allocation6 + $0x38] sm:$0xf0]  ;;  %v1483_v10 = vld [vmem:[#allocation6 + $0x54] sm:$0xf0]  ;;  %264 = vmatpush.bf16.msra.mxu0 %v1247_v4 }
  0x1d   :  { %v1289_v11 = vor.u32 %v1478_v7, %v1286_v8  ;;  %v1476_v12 = vld [vmem:[#allocation6 + $0x24] sm:$0xf]  ;;  %v1278_v13 = vld [vmem:[#allocation6 + $0x28] sm:$0xf0]  ;;  %v1774_v14 = vld [vmem:[#allocation3 + $0x4] sm:$0xf]  ;;  %v1231_v24 = vor.u32 %v1483_v10, %v1230_v6 }
  0x1e   :  { %v131_v15 = vld [vmem:[#allocation3 + $0x8] sm:$0xf]  ;;  %v132_v16 = vld [vmem:[#allocation3 + $0xc] sm:$0xf]  ;;  %v1281_v17 = vor.u32 %v1476_v12, %v1278_v13  ;;  %v119_v18 = vrot.slane %v1774_v14, 7  ;;  %vm114_vm7 = vcmask 1040384  }
  0x1f   :  { %379 = vmatpush.bf16.msra.mxu3 %v1289_v11  ;;  %v138_v19 = vrot.slane %v131_v15, 5  ;;  %v140_v20 = vrot.slane %v132_v16, 5  ;;  %v1222_v21 = vld [vmem:[#allocation6 + $0x40] sm:$0xf]  ;;  %v1481_v22 = vld [vmem:[#allocation6 + $0x44] sm:$0xf0]  ;;  %1529 = vmatpush.bf16.msra.mxu1 %v1239_v9 }
  0x20   :  { %vm115_vm8 = vcmask 1044484   ;;  %1530 = vmatpush.bf16.msra.mxu2 %v1239_v9  ;;  %v121_v25 = vrot.slane %v119_v18, 4  ;;  %v1486_v28 = vld [vmem:[#allocation6 + $0x74] sm:$0xf]  ;;  %265 = vmatpush.bf16.msra.mxu0 %v1239_v9  ;;  %v1248_v29 = vld [vmem:[#allocation6 + $0x78] sm:$0xf0]  ;;  %v1223_v37 = vor.u32 %v1481_v22, %v1222_v21 }
  0x21   :  { %v139_v26 = vrot.slane %v138_v19, 4  ;;  %v142_v27 = vrot.slane %v140_v20, 4  ;;  %147 = vst.msk [vmem:[#allocation2 + $0x8] sm:$0x8] %vm146_vm4, %v138_v19  ;;  %v1474_v30 = vld [vmem:[#allocation6 + $0x14] sm:$0xf]  ;;  %v1251_v40 = vor.u32 %v1486_v28, %v1248_v29  ;;  %vm1791_vm10 = vmor %vm114_vm7, %vm115_vm8 }
  0x22   :  { %v1270_v31 = vld [vmem:[#allocation6 + $0x18] sm:$0xf0]  ;;  %129 = vst.msk [vmem:[#allocation2 + $0x8] sm:$0x1] %vm128_vm1, %v121_v25  ;;  %v1284_v33 = vld [vmem:[#allocation6 + $0x30] sm:$0xf] }
  0x23   :  { %380 = vmatpush.bf16.msra.mxu3 %v1281_v17  ;;  %v141_v32 = vsel %vm1779_vm6, %v139_v26, %v140_v20  ;;  %v1479_v34 = vld [vmem:[#allocation6 + $0x34] sm:$0xf0]  ;;  %v1273_v35 = vor.u32 %v1474_v30, %v1270_v31  ;;  %v1472_v36 = vld [vmem:[#allocation6 + $0x4] sm:$0xf]  ;;  %vm125_vm9 = vcmask 519169   ;;  %1531 = vmatpush.bf16.msra.mxu1 %v1231_v24  ;;  %vm250_vm12 = vcmask 523264  }
  0x24   :  { %148 = vst.msk [vmem:[#allocation2 + $0xc] sm:$0xf] %vm104_vm0, %v141_v32  ;;  %1532 = vmatpush.bf16.msra.mxu2 %v1231_v24  ;;  %v1262_v38 = vld [vmem:[#allocation6 + $0x8] sm:$0xf0]  ;;  %v110_v39 = vld [vmem:[#allocation3] sm:$0xf]  ;;  %266 = vmatpush.bf16.msra.mxu0 %v1231_v24  ;;  %v1285_v41 = vor.u32 %v1479_v34, %v1284_v33 }
  0x25   :  { %150 = vst.msk [vmem:[#allocation2 + $0x10] sm:$0x7] %vm149_vm5, %v142_v27  ;;  %v1484_v42 = vld [vmem:[#allocation6 + $0x64] sm:$0xf]  ;;  %v1240_v43 = vld [vmem:[#allocation6 + $0x68] sm:$0xf0]  ;;  %v1265_v48 = vor.u32 %v1472_v36, %v1262_v38 }
  0x26   :  { %v117_v45 = vrot.slane %v110_v39, 7  ;;  %v1276_v46 = vld [vmem:[#allocation6 + $0x20] sm:$0xf]  ;;  %v1477_v47 = vld [vmem:[#allocation6 + $0x24] sm:$0xf0]  ;;  %v1243_v55 = vor.u32 %v1484_v42, %v1240_v43  ;;  %vm407_vm13 = vcmask 1046528  }
  0x27   :  { %381 = vmatpush.bf16.msra.mxu3 %v1273_v35  ;;  %v1322_v49 = vld [vmem:[#allocation6 + $0xb0] sm:$0xf]  ;;  %v1495_v51 = vld [vmem:[#allocation6 + $0xb4] sm:$0xf0]  ;;  %1533 = vmatpush.bf16.msra.mxu1 %v1223_v37  ;;  %v1482_v52 = vld [vmem:[#allocation6 + $0x54] sm:$0xf]  ;;  %v1277_v56 = vor.u32 %v1477_v47, %v1276_v46 }
  0x28   :  { %v118_v50 = vrot.slane %v117_v45, 4  ;;  %126 = vst.msk [vmem:[#allocation2] sm:$0xe] %vm125_vm9, %v117_v45  ;;  %1534 = vmatpush.bf16.msra.mxu2 %v1223_v37  ;;  %v1232_v53 = vld [vmem:[#allocation6 + $0x58] sm:$0xf0]  ;;  %v1323_v54 = vor.u32 %v1495_v51, %v1322_v49  ;;  %267 = vmatpush.bf16.msra.mxu0 %v1223_v37  ;;  %vm791_vm1 = vcmask 130048  }
  0x29   :  { %v1268_v58 = vld [vmem:[#allocation6 + $0x10] sm:$0xf]  ;;  %v1314_v59 = vld [vmem:[#allocation6 + $0xa0] sm:$0xf]  ;;  %v1493_v60 = vld [vmem:[#allocation6 + $0xa4] sm:$0xf0]  ;;  %v1235_v6 = vor.u32 %v1482_v52, %v1232_v53 }
  0x2a   :  { %v120_v57 = vsel %vm1791_vm10, %v118_v50, %v119_v18  ;;  %v1475_v62 = vld [vmem:[#allocation6 + $0x14] sm:$0xf0]  ;;  %v1315_v0 = vor.u32 %v1493_v60, %v1314_v59  ;;  %v1306_v4 = vld [vmem:[#allocation6 + $0x90] sm:$0xf]  ;;  %v1480_v8 = vld [vmem:[#allocation6 + $0x44] sm:$0xf] }
  0x2b   :  { %287 = vmatpush.bf16.msrb.mxu1 %v1251_v40  ;;  %v1798_v61 = vld [vmem:[#allocation2 + $0x8] sm:$0xff]  ;;  %382 = vmatpush.bf16.msra.mxu3 %v1265_v48  ;;  %127 = vst.msk [vmem:[#allocation2 + $0x4] sm:$0xf] %vm104_vm0, %v120_v57  ;;  %v1491_v5 = vld [vmem:[#allocation6 + $0x94] sm:$0xf0]  ;;  %v1269_v7 = vor.u32 %v1475_v62, %v1268_v58 }
  0x2c   :  { %356 = vmatpush.bf16.msrb.mxu2 %v1285_v41  ;;  %v155_v63 = vld [vmem:[#allocation2 + $0x10] sm:$0xf]  ;;  %466 = vmatpush.bf16.msrb.mxu0 %v1323_v54  ;;  %v195_v2 = vshll.u32 %v1798_v61, 16  ;;  %v199_v3 = vshrl.u32 %v1798_v61, 16  ;;  %v1260_v10 = vld [vmem:[#allocation6] sm:$0xf]  ;;  %v1307_v16 = vor.u32 %v1491_v5, %v1306_v4 }
  0x2d   :  { %v182_v1 = vunpack.c.l.b16 %v155_v63  ;;  %v1224_v9 = vld [vmem:[#allocation6 + $0x48] sm:$0xf0]  ;;  %v1473_v13 = vld [vmem:[#allocation6 + $0x4] sm:$0xf0]  ;;  %v1494_v14 = vld [vmem:[#allocation6 + $0xb4] sm:$0xf] }
  0x2e   :  { %v197_v12 = vrot.slane %v195_v2, 1  ;;  %v1324_v15 = vld [vmem:[#allocation6 + $0xb8] sm:$0xf0]  ;;  %v1298_v20 = vld [vmem:[#allocation6 + $0x80] sm:$0xf]  ;;  %v1261_v23 = vor.u32 %v1473_v13, %v1260_v10  ;;  %v1227_v25 = vor.u32 %v1480_v8, %v1224_v9  ;;  %v409_v42 = vrot.slane %v1798_v61, 1 }
  0x2f   :  { %288 = vmatpush.bf16.msrb.mxu1 %v1243_v55  ;;  %v1803_v11 = vpack.c.b16 %v182_v1, %v182_v1  ;;  %v1489_v21 = vld [vmem:[#allocation6 + $0x84] sm:$0xf0]  ;;  %vm186_vm11 = vsmask.f32 7424  ;;  %v1327_v28 = vor.u32 %v1494_v14, %v1324_v15  ;;  %v1492_v32 = vld [vmem:[#allocation6 + $0xa4] sm:$0xf] }
  0x30   :  { %357 = vmatpush.bf16.msrb.mxu2 %v1277_v56  ;;  %467 = vmatpush.bf16.msrb.mxu0 %v1315_v0  ;;  %v201_v17 = vor.u32 %v199_v3, %v197_v12  ;;  %v1299_v29 = vor.u32 %v1489_v21, %v1298_v20  ;;  %v1316_v33 = vld [vmem:[#allocation6 + $0xa8] sm:$0xf0]  ;;  %v1490_v38 = vld [vmem:[#allocation6 + $0x94] sm:$0xf]  ;;  %v1308_v39 = vld [vmem:[#allocation6 + $0x98] sm:$0xf0] }
  0x31   :  { %v203_v18 = vshll.u32 %v1803_v11, 16  ;;  %v207_v19 = vshrl.u32 %v1803_v11, 16  ;;  %v1319_v36 = vor.u32 %v1492_v32, %v1316_v33  ;;  %v1311_v40 = vor.u32 %v1490_v38, %v1308_v39  ;;  %v1488_v43 = vld [vmem:[#allocation6 + $0x84] sm:$0xf]  ;;  %v1300_v44 = vld [vmem:[#allocation6 + $0x88] sm:$0xf0] }
  0x32   :  { %v1470_v22 = vld [vmem:[#allocation2] sm:$0xff]  ;;  %v1303_v46 = vor.u32 %v1488_v43, %v1300_v44  ;;  %v1824_v47 = vrot.slane %v1803_v11, 1  ;;  %v1502_v63 = vld [vmem:[#allocation9 + $0x30] sm:$0xff]  ;;  %v1501_v2 = vld [vmem:[#allocation9 + $0x28] sm:$0xff]  ;;  %v554_v39 = vlaneseq }
  0x33   :  { %289 = vmatpush.bf16.msrb.mxu1 %v1235_v6  ;;  %v205_v24 = vrot.slane %v203_v18, 1  ;;  %v188_v26 = vshrl.u32 %v1470_v22, 16  ;;  %v190_v27 = vshll.u32 %v1470_v22, 16  ;;  %1293 = vmatmul.msk.bf16.vlgmr.msra.gmra.mxu3 %vm250_vm12, %v1470_v22  ;;  %v408_v41 = vrot.slane %v1470_v22, 1  ;;  %v1503_v60 = vld [vmem:[#allocation9 + $0x38] sm:$0xff]  ;;  %v1512_v5 = vld [vmem:[#allocation9 + $0x80] sm:$0xff] }
  0x34   :  { %358 = vmatpush.bf16.msrb.mxu2 %v1269_v7  ;;  %468 = vmatpush.bf16.msrb.mxu0 %v1307_v16  ;;  %v1833_v48 = vsel %vm407_vm13, %v409_v42, %v1824_v47  ;;  %v1513_v6 = vld [vmem:[#allocation9 + $0x88] sm:$0xff]  ;;  %v1500_v7 = vld [vmem:[#allocation9 + $0x20] sm:$0xff]  ;;  %v1499_v10 = vld [vmem:[#allocation9 + $0x18] sm:$0xff] }
  0x35   :  { %v206_v30 = vsel %vm186_vm11, %v201_v17, %v205_v24  ;;  %v209_v31 = vor.u32 %v207_v19, %v205_v24  ;;  %v192_v34 = vrot.slane %v190_v27, 1  ;;  %v1819_v45 = vsel %vm407_vm13, %v408_v41, %v409_v42  ;;  %831 = vmatpush.bf16.msrb.mxu3 %v1513_v6  ;;  %v1498_v13 = vld [vmem:[#allocation9 + $0x10] sm:$0xff]  ;;  %v1511_v14 = vld [vmem:[#allocation9 + $0x78] sm:$0xff]  ;;  %v1497_v17 = vld [vmem:[#allocation9 + $0x8] sm:$0xff] }
  0x36   :  { %1253 = vmatmul.msk.bf16.vlgmr.msra.gmra.mxu1 %vm250_vm12, %v206_v30  ;;  %v1496_v20 = vld [vmem:[#allocation9] sm:$0xff]  ;;  %v518_v27 = vld [vmem:[#allocation8] sm:$0x3] }
  0x37   :  { %1254 = vmatmul.msk.bf16.vlgmr.msra.gmra.mxu2 %vm250_vm12, %v209_v31  ;;  %290 = vmatpush.bf16.msrb.mxu1 %v1227_v25  ;;  %v193_v35 = vor.u32 %v192_v34, %v188_v26  ;;  %v1504_v21 = vld [vmem:[#allocation9 + $0x40] sm:$0xff]  ;;  %v1509_v25 = vld [vmem:[#allocation9 + $0x68] sm:$0xff] }
  0x38   :  { %359 = vmatpush.bf16.msrb.mxu2 %v1261_v23  ;;  %469 = vmatpush.bf16.msrb.mxu0 %v1299_v29 }
  0x39   :  { %v198_v37 = vsel %vm186_vm11, %v193_v35, %v197_v12 }
  0x3a   :  { %1252 = vmatmul.msk.bf16.vlgmr.msra.gmra.mxu0 %vm250_vm12, %v198_v37 }
  0x3b   :  { %489 = vmatpush.bf16.msra.mxu1 %v1327_v28 }
  0x3c   :  { %910 = vmatpush.bf16.msra.mxu0 %v1503_v60  ;;  %801 = vmatpush.bf16.msra.mxu2 %v1512_v5 }
  0x3f   :  { %490 = vmatpush.bf16.msra.mxu1 %v1319_v36  ;;  %v1880_v36 = vperm.slane %v518_v27, 1 }
  0x40   :  { %911 = vmatpush.bf16.msra.mxu0 %v1502_v63  ;;  %802 = vmatpush.bf16.msra.mxu2 %v1511_v14 }
  0x43   :  { %491 = vmatpush.bf16.msra.mxu1 %v1311_v40  ;;  %1294 = vmatmul.msk.bf16.gmra.mxu3 %vm250_vm12, %v1798_v61 }
  0x44   :  { %912 = vmatpush.bf16.msra.mxu0 %v1501_v2 }
  0x46   :  { %1255 = vmatmul.msk.bf16.vlgmr.msrb.gmra.mxu1 %vm250_vm12, %v198_v37  ;;  %v1507_v37 = vld [vmem:[#allocation9 + $0x58] sm:$0xff] }
  0x47   :  { %1290 = vmatmul.msk.bf16.vlgmr.msrb.gmra.mxu2 %vm250_vm12, %v1470_v22  ;;  %492 = vmatpush.bf16.msra.mxu1 %v1303_v46  ;;  %v1510_v22 = vld [vmem:[#allocation9 + $0x70] sm:$0xff] }
  0x48   :  { %913 = vmatpush.bf16.msra.mxu0 %v1500_v7  ;;  %803 = vmatpush.bf16.msra.mxu2 %v1510_v22  ;;  %v1506_v46 = vld [vmem:[#allocation9 + $0x50] sm:$0xff] }
  0x4a   :  { %1328 = vmatmul.msk.bf16.vlgmr.msrb.gmra.mxu0 %vm250_vm12, %v1819_v45 }
  0x4b   :  { %940 = vmatpush.bf16.msrb.mxu1 %v1504_v21 }
  0x4c   :  { %914 = vmatpush.bf16.msra.mxu0 %v1499_v10  ;;  %804 = vmatpush.bf16.msra.mxu2 %v1509_v25  ;;  %v1521_v10 = vld [vmem:[#allocation9 + $0xc8] sm:$0xff] }
  0x50   :  { %915 = vmatpush.bf16.msra.mxu0 %v1498_v13 }
  0x53   :  { %1295 = vmatmul.msk.bf16.gmra.mxu3 %vm250_vm12, %v1803_v11 }
  0x54   :  { %916 = vmatpush.bf16.msra.mxu0 %v1497_v17 }
  0x56   :  { %1256 = vmatmul.msk.bf16.gmra.mxu1 %vm250_vm12, %v206_v30  ;;  %v1508_v30 = vld [vmem:[#allocation9 + $0x60] sm:$0xff] }
  0x57   :  { %1291 = vmatmul.msk.bf16.gmra.mxu2 %vm250_vm12, %v1798_v61 }
  0x58   :  { %917 = vmatpush.bf16.msra.mxu0 %v1496_v20  ;;  %805 = vmatpush.bf16.msra.mxu2 %v1508_v30 }
  0x5a   :  { %1329 = vmatmul.msk.bf16.gmra.mxu0 %vm250_vm12, %v1833_v48 }
  0x5c   :  { %806 = vmatpush.bf16.msra.mxu2 %v1507_v37  ;;  %v1519_v37 = vld [vmem:[#allocation9 + $0xb8] sm:$0xff] }
  0x60   :  { %807 = vmatpush.bf16.msra.mxu2 %v1506_v46  ;;  %v1525_v46 = vld [vmem:[#allocation11 + $0x10] sm:$0xff] }
  0x66   :  { %1257 = vmatmul.msk.bf16.gmra.mxu1 %vm250_vm12, %v209_v31  ;;  %v1876_v31 = vperm.slane %v518_v27, 0 }
  0x67   :  { %1292 = vmatmul.msk.bf16.gmra.mxu2 %vm250_vm12, %v1803_v11 }
  0x6a   :  { %1330 = vmatmul.msk.bf16.gmra.mxu0 %vm250_vm12, %v1824_v47 }
  0x76   :  { %1331 = vmatmul.msk.bf16.vlgmr.msra.gmra.mxu1 %vm250_vm12, %v1819_v45 }
  0x86   :  { %1332 = vmatmul.msk.bf16.gmra.mxu1 %vm250_vm12, %v1833_v48 }
  0x96   :  { %1333 = vmatmul.msk.bf16.gmra.mxu1 %vm250_vm12, %v1824_v47 }
  0xb3   :  { %v1848_v49 = vpop.f32.mrf.mxu1 }
  0xb6   :  { %v1850_v50 = vpop.f32.mrf.mxu3 }
  0xb7   :  { %v269_v51 = vpop.f32.mrf.mxu0 }
  0xba   :  { %v1852_v52 = vpop.f32.mrf.mxu2 }
  0xbb   :  { %v1854_v53 = vpop.f32.mrf.mxu1 }
  0xbe   :  { %v1856_v54 = vpop.f32.mrf.mxu3 }
  0xbf   :  { %v271_v55 = vpop.f32.mrf.mxu0 }
  0xc2   :  { %v281_v56 = vpop.f32.mrf.mxu2 }
  0xc3   :  { %v292_v57 = vpop.f32.mrf.mxu1 }
  0xc4   :  { %v385_v34 = vadd.f32 %v1850_v50, %v292_v57 }
  0xc6   :  { %v1858_v58 = vpop.f32.mrf.mxu3 }
  0xc7   :  { %v471_v59 = vpop.f32.mrf.mxu0 }
  0xca   :  { %v361_v61 = vpop.f32.mrf.mxu2 }
  0xcb   :  { %v1860_v62 = vpop.f32.mrf.mxu1  ;;  %v362_v23 = vadd.f32 %v361_v61, %v269_v51  ;;  %v1883_v51 = vshrl.u32 %v554_v39, 7  ;;  %v1505_v61 = vld [vmem:[#allocation9 + $0x48] sm:$0xff] }
  0xcc   :  { %808 = vmatpush.bf16.msra.mxu2 %v1505_v61 }
  0xcd   :  { %v508_v29 = vadd.f32 %v471_v59, %v362_v23  ;;  %vm565_vm14 = vcmp.ge.s32.totalorder %v1883_v51, 1 }
  0xce   :  { %v1862_v0 = vpop.f32.mrf.mxu3 }
  0xcf   :  { %v473_v1 = vpop.f32.mrf.mxu0  ;;  %v524_v32 = vadd.f32 %v1876_v31, %v508_v29 }
  0xd0   :  { %1051 = vmatpush.bf16.msrb.mxu2 %v1521_v10 }
  0xd1   :  { %v534_v41 = vmul.f32 0.1, %v524_v32 }
  0xd2   :  { %v363_v3 = vpop.f32.mrf.mxu2 }
  0xd3   :  { %v1864_v4 = vpop.f32.mrf.mxu1  ;;  %v364_v35 = vadd.f32 %v363_v3, %v271_v55  ;;  %v544_v56 = vmax.f32 %v524_v32, %v534_v41  ;;  %v387_v55 = vadd.f32 %v1856_v54, %v1860_v62  ;;  %v557_v54 = vadd.s32 16, %v1883_v51 }
  0xd5   :  { %v510_v43 = vadd.f32 %v473_v1, %v364_v35  ;;  %v615_v1 = vsel %vm565_vm14, %v544_v56, 0.0  ;;  %vm572_vm15 = vcmp.le.s32.totalorder %v557_v54, 16  ;;  %vm587_vm0 = vcmp.ge.s32.totalorder %v557_v54, 21 }
  0xd6   :  { %v1866_v8 = vpop.f32.mrf.mxu3  ;;  %vm602_vm2 = vmor %vm572_vm15, %vm587_vm0 }
  0xd7   :  { %v476_v9 = vpop.f32.mrf.mxu0  ;;  %v526_v57 = vadd.f32 %v1876_v31, %v510_v43 }
  0xd9   :  { %v536_v7 = vmul.f32 0.1, %v526_v57 }
  0xda   :  { %v366_v11 = vpop.f32.mrf.mxu2 }
  0xdb   :  { %v1868_v12 = vpop.f32.mrf.mxu1  ;;  %v367_v59 = vadd.f32 %v366_v11, %v1848_v49  ;;  %v1522_v11 = vld [vmem:[#allocation9 + $0xd0] sm:$0xff]  ;;  %v546_v17 = vmax.f32 %v526_v57, %v536_v7 }
  0xdc   :  { %1081 = vmatpush.bf16.msra.mxu3 %v1522_v11 }
  0xdd   :  { %v512_v2 = vadd.f32 %v476_v9, %v367_v59  ;;  %v390_v9 = vadd.f32 %v1858_v58, %v1864_v4 }
  0xde   :  { %v396_v15 = vpop.f32.mrf.mxu3 }
  0xdf   :  { %v1870_v16 = vpop.f32.mrf.mxu0  ;;  %v528_v13 = vadd.f32 %v1876_v31, %v512_v2  ;;  %v1520_v15 = vld [vmem:[#allocation9 + $0xc0] sm:$0xff] }
  0xe0   :  { %1052 = vmatpush.bf16.msrb.mxu2 %v1520_v15 }
  0xe1   :  { %v538_v22 = vmul.f32 0.1, %v528_v13 }
  0xe2   :  { %v368_v18 = vpop.f32.mrf.mxu2 }
  0xe3   :  { %v1872_v19 = vpop.f32.mrf.mxu1  ;;  %v369_v14 = vadd.f32 %v368_v18, %v1854_v53  ;;  %v548_v58 = vmax.f32 %v528_v13, %v538_v22 }
  0xe4   :  { %1053 = vmatpush.bf16.msrb.mxu2 %v1519_v37  ;;  %v395_v57 = vadd.f32 %v1866_v8, %v1872_v19 }
  0xe5   :  { %v514_v27 = vadd.f32 %v1870_v16, %v369_v14 }
  0xe7   :  { %v1874_v24 = vpop.f32.mrf.mxu0 }
  0xea   :  { %v371_v26 = vpop.f32.mrf.mxu2 }
  0xeb   :  { %v304_v28 = vpop.f32.mrf.mxu1 }
  0xec   :  { %v372_v28 = vadd.f32 %v371_v26, %v1852_v52  ;;  %v392_v52 = vadd.f32 %v1862_v0, %v1868_v12  ;;  %v530_v26 = vadd.f32 %v1876_v31, %v514_v27 }
  0xee   :  { %v516_v16 = vadd.f32 %v1874_v24, %v372_v28  ;;  %v540_v0 = vmul.f32 0.1, %v530_v26 }
  0xef   :  { %v483_v33 = vpop.f32.mrf.mxu0 }
  0xf0   :  { %v532_v24 = vadd.f32 %v1876_v31, %v516_v16 }
  0xf2   :  { %v373_v38 = vpop.f32.mrf.mxu2  ;;  %v542_v59 = vmul.f32 0.1, %v532_v24 }
  0xf3   :  { %v494_v40 = vpop.f32.mrf.mxu1  ;;  %v1526_v38 = vld [vmem:[#allocation11 + $0x18] sm:$0xff] }
  0xf4   :  { %v509_v42 = vadd.f32 %v494_v40, %v385_v34  ;;  %v619_v40 = vsel %vm602_vm2, %v548_v58, 0.0  ;;  %1161 = vmatpush.bf16.msrb.mxu0 %v1526_v38 }
  0xf6   :  { %v525_v44 = vadd.f32 %v1880_v36, %v509_v42 }
  0xf8   :  { %v535_v50 = vmul.f32 0.1, %v525_v44  ;;  %1162 = vmatpush.bf16.msrb.mxu0 %v1525_v46 }
  0xfa   :  { %v545_v60 = vmax.f32 %v525_v44, %v535_v50  ;;  %v1518_v44 = vld [vmem:[#allocation9 + $0xb0] sm:$0xff]  ;;  %v559_v50 = vadd.s32 32, %v1883_v51  ;;  %v1516_v51 = vld [vmem:[#allocation9 + $0xa0] sm:$0xff] }
  0xfb   :  { %v496_v63 = vpop.f32.mrf.mxu1  ;;  %1054 = vmatpush.bf16.msrb.mxu2 %v1518_v44 }
  0xfc   :  { %v616_v3 = vsel %vm565_vm14, %v545_v60, 0.0  ;;  %v511_v5 = vadd.f32 %v496_v63, %v387_v55  ;;  %v1517_v55 = vld [vmem:[#allocation9 + $0xa8] sm:$0xff]  ;;  %v550_v60 = vmax.f32 %v530_v26, %v540_v0  ;;  %vm594_vm3 = vcmp.le.s32.totalorder %v559_v50, 36  ;;  %v1515_v26 = vld [vmem:[#allocation9 + $0x98] sm:$0xff] }
  0xfd   :  { %v625_v6 = vpack.c.bf16 %v616_v3, %v615_v1 }
  0xfe   :  { %v527_v49 = vadd.f32 %v1880_v36, %v511_v5  ;;  %v552_v5 = vmax.f32 %v532_v24, %v542_v59 }
  0xff   :  { %v673_v29 = vunpack.c.h.b16 %v625_v6  ;;  %v672_v32 = vunpack.c.l.b16 %v625_v6  ;;  %1055 = vmatpush.bf16.msrb.mxu2 %v1517_v55 }
 0x100   :  { %v537_v62 = vmul.f32 0.1, %v527_v49  ;;  %v623_v14 = vsel %vm594_vm3, %v552_v5, 0.0 }
 0x102   :  { %v547_v20 = vmax.f32 %v527_v49, %v537_v62 }
 0x103   :  { %v499_v21 = vpop.f32.mrf.mxu1  ;;  %1056 = vmatpush.bf16.msrb.mxu2 %v1516_v51 }
 0x104   :  { %v626_v23 = vpack.c.bf16 %v547_v20, %v546_v17  ;;  %v513_v25 = vadd.f32 %v499_v21, %v390_v9 }
 0x106   :  { %v674_v53 = vunpack.c.l.b16 %v626_v23  ;;  %v675_v18 = vunpack.c.h.b16 %v626_v23  ;;  %v529_v30 = vadd.f32 %v1880_v36, %v513_v25 }
 0x107   :  { %1057 = vmatpush.bf16.msrb.mxu2 %v1515_v26 }
 0x108   :  { %v1899_v4 = vpack.c.b16 %v675_v18, %v673_v29  ;;  %v539_v33 = vmul.f32 0.1, %v529_v30  ;;  %v1901_v34 = vpack.c.b16 %v674_v53, %v672_v32 }
 0x10a   :  { %v549_v35 = vmax.f32 %v529_v30, %v539_v33  ;;  %918 = vmatmul.bf16.vlgmr.msra.gmra.mxu0 %v1901_v34  ;;  %1409 = vmatmul.msk.bf16.vlgmr.msrb.gmra.mxu1 %vm791_vm1, %v1899_v4  ;;  %v691_v31 = vshll.u32 %v1901_v34, 16  ;;  %v703_v3 = vshll.u32 %v1899_v4, 16  ;;  %v689_v15 = vshrl.u32 %v1901_v34, 16 }
 0x10b   :  { %v501_v39 = vpop.f32.mrf.mxu1  ;;  %v701_v9 = vshrl.u32 %v1899_v4, 16  ;;  %v978_v27 = vrot.slane %v1899_v4, 1 }
 0x10c   :  { %v620_v41 = vsel %vm602_vm2, %v549_v35, 0.0  ;;  %v515_v42 = vadd.f32 %v501_v39, %v392_v52  ;;  %v693_v8 = vrot.slane %v691_v31, 1  ;;  %v705_v62 = vrot.slane %v703_v3, 1  ;;  %v1524_v35 = vld [vmem:[#allocation11 + $0x8] sm:$0xff]  ;;  %v1514_v39 = vld [vmem:[#allocation9 + $0x90] sm:$0xff] }
 0x10d   :  { %v627_v43 = vpack.c.bf16 %v620_v41, %v619_v40  ;;  %1163 = vmatpush.bf16.msrb.mxu0 %v1524_v35  ;;  %1058 = vmatpush.bf16.msrb.mxu2 %v1514_v39 }
 0x10e   :  { %v531_v12 = vadd.f32 %v1880_v36, %v515_v42  ;;  %v694_v23 = vor.u32 %v693_v8, %v689_v15  ;;  %v706_v18 = vor.u32 %v705_v62, %v701_v9 }
 0x10f   :  { %v676_v6 = vunpack.c.l.b16 %v627_v43  ;;  %v677_v11 = vunpack.c.h.b16 %v627_v43 }
 0x110   :  { %v541_v56 = vmul.f32 0.1, %v531_v12 }
 0x112   :  { %v551_v61 = vmax.f32 %v531_v12, %v541_v56 }
 0x113   :  { %v504_v63 = vpop.f32.mrf.mxu1 }
 0x114   :  { %v628_v1 = vpack.c.bf16 %v551_v61, %v550_v60  ;;  %v517_v2 = vadd.f32 %v504_v63, %v395_v57  ;;  %v1523_v60 = vld [vmem:[#allocation11] sm:$0xff] }
 0x115   :  { %1164 = vmatpush.bf16.msrb.mxu0 %v1523_v60 }
 0x116   :  { %v678_v7 = vunpack.c.l.b16 %v628_v1  ;;  %v679_v49 = vunpack.c.h.b16 %v628_v1  ;;  %v533_v10 = vadd.f32 %v1880_v36, %v517_v2  ;;  %v975_v36 = vrot.slane %v1901_v34, 1 }
 0x118   :  { %v543_v19 = vmul.f32 0.1, %v533_v10  ;;  %v684_v13 = vpack.c.b16 %v678_v7, %v676_v6  ;;  %v685_v54 = vpack.c.b16 %v679_v49, %v677_v11 }
 0x11a   :  { %v553_v17 = vmax.f32 %v533_v10, %v543_v19  ;;  %923 = vmatmul.bf16.gmra.mxu0 %v684_v13  ;;  %1410 = vmatmul.msk.bf16.gmra.mxu1 %vm791_vm1, %v685_v54  ;;  %v696_v20 = vshll.u32 %v684_v13, 16  ;;  %v708_v21 = vshll.u32 %v685_v54, 16  ;;  %v976_v25 = vrot.slane %v684_v13, 1 }
 0x11b   :  { %v506_v22 = vpop.f32.mrf.mxu1  ;;  %v979_v28 = vrot.slane %v685_v54, 1  ;;  %v712_v40 = vshrl.u32 %v684_v13, 16  ;;  %v720_v42 = vshrl.u32 %v685_v54, 16 }
 0x11c   :  { %v624_v29 = vsel %vm594_vm3, %v553_v17, 0.0  ;;  %v698_v53 = vrot.slane %v696_v20, 1  ;;  %v710_v30 = vrot.slane %v708_v21, 1  ;;  %v977_v58 = vsel %vm407_vm13, %v975_v36, %v976_v25 }
 0x11d   :  { %v629_v32 = vpack.c.bf16 %v624_v29, %v623_v14  ;;  %v980_v33 = vsel %vm407_vm13, %v978_v27, %v979_v28 }
 0x11e   :  { %v699_v16 = vsel %vm186_vm11, %v694_v23, %v698_v53  ;;  %v711_v34 = vsel %vm186_vm11, %v706_v18, %v710_v30  ;;  %v714_v12 = vor.u32 %v712_v40, %v698_v53  ;;  %v722_v46 = vor.u32 %v720_v42, %v710_v30 }
 0x11f   :  { %809 = vmatmul.bf16.vlgmr.msra.gmra.mxu2 %v699_v16  ;;  %1370 = vmatmul.msk.bf16.vlgmr.msrb.gmra.mxu3 %vm791_vm1, %v711_v34  ;;  %v680_v52 = vunpack.c.l.b16 %v629_v32  ;;  %v681_v4 = vunpack.c.h.b16 %v629_v32 }
 0x121   :  { %v686_v37 = vpack.c.b16 %v680_v52, %v680_v52  ;;  %v687_v38 = vpack.c.b16 %v681_v4, %v681_v4 }
 0x123   :  { %v716_v41 = vshll.u32 %v686_v37, 16  ;;  %v724_v24 = vshll.u32 %v687_v38, 16  ;;  %v981_v43 = vrot.slane %v686_v37, 1  ;;  %v983_v0 = vrot.slane %v687_v38, 1 }
 0x124   :  { %v728_v61 = vshrl.u32 %v686_v37, 16  ;;  %v731_v63 = vshrl.u32 %v687_v38, 16 }
 0x125   :  { %v718_v44 = vrot.slane %v716_v41, 1  ;;  %v726_v56 = vrot.slane %v724_v24, 1  ;;  %v982_v59 = vsel %vm407_vm13, %v976_v25, %v981_v43  ;;  %v984_v50 = vsel %vm407_vm13, %v979_v28, %v983_v0  ;;  %v1547_v41 = vld [vmem:[%s1963_s4] ss:$0 sm:$0xff]  ;;  %s1710_s4 = smov [#allocation12]  }
 0x126   :  { %v1546_v24 = vld [vmem:[%s1965_s6] ss:$0 sm:$0xff]  ;;  %s1195_s6 = sshll.u32 %s1710_s4, 4  ;;  %s1196_s6 = int_to_ptr.vmem [resolvable:$true] %s1195_s6 }
 0x127   :  { %v719_v55 = vsel %vm186_vm11, %v714_v12, %v718_v44  ;;  %v727_v57 = vsel %vm186_vm11, %v722_v46, %v726_v56  ;;  %v730_v31 = vor.u32 %v728_v61, %v718_v44  ;;  %v733_v1 = vor.u32 %v731_v63, %v726_v56 }
 0x12a   :  { %928 = vmatmul.bf16.gmra.mxu0 %v686_v37  ;;  %1411 = vmatmul.msk.bf16.gmra.mxu1 %vm791_vm1, %v687_v38 }
 0x12f   :  { %814 = vmatmul.bf16.gmra.mxu2 %v719_v55  ;;  %1371 = vmatmul.msk.bf16.gmra.mxu3 %vm791_vm1, %v727_v57 }
 0x13a   :  { %1467 = vmatmul.msk.bf16.vlgmr.msrb.gmra.mxu0 %vm250_vm12, %v1819_v45 }
 0x13f   :  { %819 = vmatmul.bf16.gmra.mxu2 %v730_v31  ;;  %1372 = vmatmul.msk.bf16.gmra.mxu3 %vm791_vm1, %v733_v1 }
 0x14a   :  { %1468 = vmatmul.msk.bf16.gmra.mxu0 %vm250_vm12, %v1833_v48 }
 0x14f   :  { %1059 = vmatmul.bf16.vlgmr.msrb.gmra.mxu2 %v977_v58  ;;  %1448 = vmatmul.msk.bf16.vlgmr.msra.gmra.mxu3 %vm791_vm1, %v980_v33 }
 0x15a   :  { %1469 = vmatmul.msk.bf16.gmra.mxu0 %vm250_vm12, %v1824_v47 }
 0x15f   :  { %1064 = vmatmul.bf16.gmra.mxu2 %v982_v59  ;;  %1449 = vmatmul.msk.bf16.gmra.mxu3 %vm791_vm1, %v984_v50 }
 0x16f   :  { %1069 = vmatmul.bf16.gmra.mxu2 %v981_v43  ;;  %1450 = vmatmul.msk.bf16.gmra.mxu3 %vm791_vm1, %v983_v0 }
 0x187   :  { %v919_v45 = vpop.f32.mrf.mxu0  ;;  %v942_v2 = vpop.f32.mrf.mxu1 }
 0x18f   :  { %v921_v3 = vpop.f32.mrf.mxu0  ;;  %v944_v5 = vpop.f32.mrf.mxu1 }
 0x197   :  { %v924_v6 = vpop.f32.mrf.mxu0  ;;  %v947_v51 = vpop.f32.mrf.mxu1 }
 0x19f   :  { %v926_v7 = vpop.f32.mrf.mxu0  ;;  %v949_v48 = vpop.f32.mrf.mxu1 }
 0x1a2   :  { %v810_v49 = vpop.f32.mrf.mxu2  ;;  %v833_v10 = vpop.f32.mrf.mxu3 }
 0x1a3   :  { %v834_v11 = vadd.f32 %v833_v10, %v810_v49 }
 0x1a5   :  { %v920_v8 = vadd.f32 %v919_v45, %v834_v11 }
 0x1a7   :  { %v929_v19 = vpop.f32.mrf.mxu0  ;;  %v952_v47 = vpop.f32.mrf.mxu1  ;;  %v943_v13 = vadd.f32 %v942_v2, %v920_v8 }
 0x1aa   :  { %v812_v54 = vpop.f32.mrf.mxu2  ;;  %v835_v62 = vpop.f32.mrf.mxu3 }
 0x1ab   :  { %v836_v14 = vadd.f32 %v835_v62, %v812_v54 }
 0x1ad   :  { %v922_v15 = vadd.f32 %v921_v3, %v836_v14 }
 0x1af   :  { %v931_v9 = vpop.f32.mrf.mxu0  ;;  %v954_v17 = vpop.f32.mrf.mxu1  ;;  %v945_v20 = vadd.f32 %v944_v5, %v922_v15 }
 0x1b2   :  { %v815_v21 = vpop.f32.mrf.mxu2  ;;  %v838_v36 = vpop.f32.mrf.mxu3 }
 0x1b3   :  { %v839_v22 = vadd.f32 %v838_v36, %v815_v21 }
 0x1b5   :  { %v925_v23 = vadd.f32 %v924_v6, %v839_v22 }
 0x1b7   :  { %v1166_v25 = vpop.f32.mrf.mxu0  ;;  %v948_v27 = vadd.f32 %v947_v51, %v925_v23 }
 0x1b8   :  { %v1167_v56 = vadd.f32 %v1546_v24, %v1166_v25 }
 0x1ba   :  { %v817_v28 = vpop.f32.mrf.mxu2  ;;  %v840_v29 = vpop.f32.mrf.mxu3 }
 0x1bb   :  { %v841_v53 = vadd.f32 %v840_v29, %v817_v28 }
 0x1bd   :  { %v927_v18 = vadd.f32 %v926_v7, %v841_v53 }
 0x1bf   :  { %v1168_v30 = vpop.f32.mrf.mxu0  ;;  %v950_v32 = vadd.f32 %v949_v48, %v927_v18 }
 0x1c0   :  { %v1169_v45 = vadd.f32 %v1546_v24, %v1168_v30 }
 0x1c2   :  { %v820_v58 = vpop.f32.mrf.mxu2  ;;  %v843_v33 = vpop.f32.mrf.mxu3 }
 0x1c3   :  { %v844_v16 = vadd.f32 %v843_v33, %v820_v58 }
 0x1c5   :  { %v930_v34 = vadd.f32 %v929_v19, %v844_v16 }
 0x1c7   :  { %v1171_v52 = vpop.f32.mrf.mxu0  ;;  %v953_v4 = vadd.f32 %v952_v47, %v930_v34 }
 0x1c8   :  { %v1172_v10 = vadd.f32 %v1546_v24, %v1171_v52 }
 0x1ca   :  { %v822_v26 = vpop.f32.mrf.mxu2  ;;  %v845_v35 = vpop.f32.mrf.mxu3 }
 0x1cf   :  { %v1173_v37 = vpop.f32.mrf.mxu0 }
 0x1d0   :  { %v1174_v15 = vadd.f32 %v1546_v24, %v1173_v37 }
 0x1d2   :  { %v1060_v38 = vpop.f32.mrf.mxu2  ;;  %v1083_v39 = vpop.f32.mrf.mxu3 }
 0x1d3   :  { %v1084_v40 = vadd.f32 %v1083_v39, %v1060_v38 }
 0x1d5   :  { %v1097_v42 = vadd.f32 %v1084_v40, %v943_v13 }
 0x1d7   :  { %v1106_v43 = vadd.f32 %v1547_v41, %v1097_v42  ;;  %v1176_v0 = vpop.f32.mrf.mxu0 }
 0x1d9   :  { %v1111_v12 = vmul.f32 0.1, %v1106_v43 }
 0x1da   :  { %v1062_v44 = vpop.f32.mrf.mxu2  ;;  %v1085_v46 = vpop.f32.mrf.mxu3 }
 0x1db   :  { %v1116_v59 = vmax.f32 %v1106_v43, %v1111_v12  ;;  %v1086_v50 = vadd.f32 %v1085_v46, %v1062_v44 }
 0x1dd   :  { %v1180_v55 = vadd.f32 %v1167_v56, %v1116_v59  ;;  %v1098_v57 = vadd.f32 %v1086_v50, %v945_v20 }
 0x1df   :  { %1185 = vst [vmem:[#allocation12] sm:$0xff] %v1180_v55  ;;  %v1107_v60 = vadd.f32 %v1547_v41, %v1098_v57  ;;  %v1178_v61 = vpop.f32.mrf.mxu0 }
 0x1e1   :  { %v1112_v63 = vmul.f32 0.1, %v1107_v60 }
 0x1e2   :  { %v1065_v31 = vpop.f32.mrf.mxu2  ;;  %v1088_v1 = vpop.f32.mrf.mxu3 }
 0x1e3   :  { %v1117_v2 = vmax.f32 %v1107_v60, %v1112_v63  ;;  %v1089_v3 = vadd.f32 %v1088_v1, %v1065_v31 }
 0x1e5   :  { %v1181_v5 = vadd.f32 %v1169_v45, %v1117_v2  ;;  %v1099_v6 = vadd.f32 %v1089_v3, %v948_v27  ;;  %v1177_v27 = vadd.f32 %v1546_v24, %v1176_v0 }
 0x1e7   :  { %1186 = vst [vmem:[#allocation12 + $0x8] sm:$0xff] %v1181_v5  ;;  %v1108_v51 = vadd.f32 %v1547_v41, %v1099_v6 }
 0x1e9   :  { %v1113_v7 = vmul.f32 0.1, %v1108_v51 }
 0x1ea   :  { %v1067_v48 = vpop.f32.mrf.mxu2  ;;  %v1090_v49 = vpop.f32.mrf.mxu3 }
 0x1eb   :  { %v1118_v11 = vmax.f32 %v1108_v51, %v1113_v7  ;;  %v1091_v8 = vadd.f32 %v1090_v49, %v1067_v48 }
 0x1ed   :  { %v1182_v19 = vadd.f32 %v1172_v10, %v1118_v11  ;;  %v1100_v47 = vadd.f32 %v1091_v8, %v950_v32 }
 0x1ef   :  { %1188 = vst [vmem:[#allocation12 + $0xc] sm:$0xf0] %v1182_v19  ;;  %v1109_v13 = vadd.f32 %v1547_v41, %v1100_v47 }
 0x1f1   :  { %v1114_v54 = vmul.f32 0.1, %v1109_v13 }
 0x1f2   :  { %v1070_v62 = vpop.f32.mrf.mxu2  ;;  %v1093_v14 = vpop.f32.mrf.mxu3 }
 0x1f3   :  { %v1119_v9 = vmax.f32 %v1109_v13, %v1114_v54  ;;  %v1094_v17 = vadd.f32 %v1093_v14, %v1070_v62 }
 0x1f5   :  { %v1183_v20 = vadd.f32 %v1174_v15, %v1119_v9  ;;  %v1101_v21 = vadd.f32 %v1094_v17, %v953_v4 }
 0x1f7   :  { %1189 = vst [vmem:[#allocation12 + $0x14] sm:$0xff] %v1183_v20  ;;  %v1110_v36 = vadd.f32 %v1547_v41, %v1101_v21 }
 0x1f9   :  { %v1115_v22 = vmul.f32 0.1, %v1110_v36 }
 0x1fa   :  { %v1072_v23 = vpop.f32.mrf.mxu2  ;;  %v1095_v25 = vpop.f32.mrf.mxu3 }
 0x1fb   :  { %v1120_v28 = vmax.f32 %v1110_v36, %v1115_v22 }
 0x1fd   :  { %v1184_v29 = vadd.f32 %v1177_v27, %v1120_v28 }
 0x1ff   :  { %1190 = vst [vmem:[#allocation12 + $0x1c] sm:$0xf] %v1184_v29 }
 0x200   :  { %1203 = dma.vmem_to_hbm [thread:$0]  %s1196_s6, 512, %s1198_s10, [#allocation5], %s1701_s29, %s1701_s29, %s1702_s30  }
 0x201   :  { %1698 = dma.done.wait [#allocation5], 512  }
 0x202   :  { %1699 = vsyncadd [#allocation5], 4294966784 }
 0x203   :  { %1208 = vsyncpa [#allocation4], 1 }
 0x204   :  { %1209 = vsyncpa [#allocation7], 1 }
 0x205   :  { %1210 = vsyncpa [#allocation10], 1 }
 0x206   :  { %1211 = vsyncpa [#allocation5], 1 }

</bundles_post_ra>
